<compile_context>
chip_gen: v7x
topology: tpu7x:2x2x1
jax: 0.10.0
libtpu: 0.0.40
codegen_flags: <defaults>
</compile_context>

<pallas_src>
import functools
import math

import jax
import jax.numpy as jnp
from jax.experimental import pallas as pl
from jax.experimental.pallas import tpu as pltpu

_LANE = 128


# ------------------------------ kernel body ----------------------------------
def _make_ffn_kernel(has_identity_ref: bool, add_identity: bool):
    """FFN kernel body for one row tile.

    Refs per grid step:
      x_ref   : (tm, E')  activations (caller dtype; cast to bf16 for the MXU)
      idn_ref : (tm, O')  optional explicit identity tensor
      w1_ref  : (E', F')  fc1 weight, bf16, resident across the grid
      b1_ref  : (1,  F')  fc1 bias, f32
      w2_ref  : (F', O')  fc2 weight, bf16, resident across the grid
      b2_ref  : (1,  O')  fc2 bias, f32
      o_ref   : (tm, O')  output tile (caller dtype)
    """

    def _body(x_ref, idn_ref, w1_ref, b1_ref, w2_ref, b2_ref, o_ref):
        mxu_dt = w1_ref.dtype
        x = x_ref[...]                                        # (tm, E')
        # fc1: bf16 operands on the MXU, f32 accumulation; bias+ReLU in f32.
        h = jnp.dot(x.astype(mxu_dt), w1_ref[...],
                    preferred_element_type=jnp.float32)       # (tm, F') f32
        h = jnp.maximum(h + b1_ref[...], 0.0)
        # fc2
        y = jnp.dot(h.astype(mxu_dt), w2_ref[...],
                    preferred_element_type=jnp.float32)       # (tm, O') f32
        y = y + b2_ref[...]
        if add_identity:
            res = idn_ref[...] if has_identity_ref else x
            y = y + res.astype(jnp.float32)
        o_ref[...] = y.astype(o_ref.dtype)

    if has_identity_ref:
        def kernel(x_ref, idn_ref, w1_ref, b1_ref, w2_ref, b2_ref, o_ref):
            _body(x_ref, idn_ref, w1_ref, b1_ref, w2_ref, b2_ref, o_ref)
    else:
        def kernel(x_ref, w1_ref, b1_ref, w2_ref, b2_ref, o_ref):
            _body(x_ref, None, w1_ref, b1_ref, w2_ref, b2_ref, o_ref)
    return kernel


# ------------------------------ helpers ---------------------------------------
def _round_up(n, m):
    return ((n + m - 1) // m) * m


def _lane_fold_factor(e, o):
    """Smallest r such that both r*e and r*o are multiples of 128 lanes."""
    r1 = _LANE // math.gcd(_LANE, e)
    r2 = _LANE // math.gcd(_LANE, o)
    return r1 * r2 // math.gcd(r1, r2)


def _block_diag(w, r):
    """kron(I_r, w): block-diagonal replication of w, r times."""
    if r == 1:
        return w
    return jnp.kron(jnp.eye(r, dtype=w.dtype), w)


def _choose_tile_rows(rows, tile_m, min_steps):
    """Pick the folded-row tile: big (amortize per-step cost) but with at
    least `min_steps` grid steps for megacore when the workload allows."""
    if rows <= 64:
        return rows                              # single full-extent block
    target = _round_up(pl.cdiv(rows, max(min_steps, 1)), 8)
    tile = max(8, min(tile_m, target))
    return min(tile, _round_up(rows, 8))


def _const_spec(shape, single_buffer):
    """BlockSpec for a grid-resident (constant index_map) operand."""
    index_map = lambda i: (0,) * len(shape)
    if single_buffer:
        try:
            # Constant block -> no need to double-buffer it; saves VMEM.
            return pl.BlockSpec(shape, index_map, pipeline_mode=pl.Buffered(1))
        except (TypeError, ValueError):
            pass  # older jax without pipeline_mode / Buffered(1)
    return pl.BlockSpec(shape, index_map)


def _vmem_limit_bytes(tile_rows, Ef, Ff, Of, x_dtype, out_dtype, w_dtype,
                      has_identity, single_buffer_weights):
    xi = jnp.dtype(x_dtype).itemsize
    oi = jnp.dtype(out_dtype).itemsize
    wi = jnp.dtype(w_dtype).itemsize
    wbuf = 1 if single_buffer_weights else 2
    weights = wbuf * ((Ef * Ff + Ff * Of) * wi + (Ff + Of) * 4)
    streams = 2 * tile_rows * (Ef * xi + Of * oi
                               + (Of * xi if has_identity else 0))
    # live intermediates: h (f32) + h bf16 cast + x bf16 cast + y (f32)
    live = tile_rows * (Ff * 4 + Ff * wi + Ef * wi + Of * 4)
    est = weights + streams + live
    return int(min(max(est * 5 // 4 + (2 << 20), 16 << 20), 48 << 20))


# ------------------------------ forward ---------------------------------------
@functools.partial(
    jax.jit,
    static_argnames=("r", "add_identity", "tile_m", "min_steps",
                     "single_buffer_weights"))
def _ffn_forward(x, w1f, b1f, w2f, b2f, identity=None, *, r, add_identity,
                 tile_m, min_steps, single_buffer_weights):
    Ef, Ff = w1f.shape
    Of = w2f.shape[1]
    E, O = Ef // r, Of // r
    assert x.shape[-1] == E

    leading = x.shape[:-1]
    x2 = x.reshape(-1, E)
    M = x2.shape[0]

    use_sep_identity = add_identity and (identity is not None)
    if add_identity and not use_sep_identity:
        assert O == E, "fused identity residual requires output_dim == embed_dim"
    idn2 = identity.reshape(-1, O) if use_sep_identity else None

    # Lane-density folding: r token rows -> one 128-lane-dense row.  Pad only
    # when M is not a multiple of r (rare); ragged *tiles* are handled by the
    # masked partial last block below, not by padding.
    Mp = _round_up(M, r)
    if Mp != M:
        x2 = jnp.pad(x2, ((0, Mp - M), (0, 0)))
        if use_sep_identity:
            idn2 = jnp.pad(idn2, ((0, Mp - M), (0, 0)))
    rows = Mp // r
    xf = x2.reshape(rows, Ef)
    idnf = idn2.reshape(rows, Of) if use_sep_identity else None

    tile_rows = _choose_tile_rows(rows, tile_m, min_steps)
    grid = (pl.cdiv(rows, tile_rows),)   # last block may be partial (masked)

    kernel = _make_ffn_kernel(use_sep_identity, add_identity)

    in_specs = [pl.BlockSpec((tile_rows, Ef), lambda i: (i, 0))]
    operands = [xf]
    if use_sep_identity:
        in_specs.append(pl.BlockSpec((tile_rows, Of), lambda i: (i, 0)))
        operands.append(idnf)
    in_specs += [
        _const_spec((Ef, Ff), single_buffer_weights),   # W1 (resident)
        _const_spec((1, Ff), single_buffer_weights),    # b1
        _const_spec((Ff, Of), single_buffer_weights),   # W2 (resident)
        _const_spec((1, Of), single_buffer_weights),    # b2
    ]
    operands += [w1f, b1f, w2f, b2f]

    vmem_limit = _vmem_limit_bytes(tile_rows, Ef, Ff, Of, x.dtype, x.dtype,
                                   w1f.dtype, use_sep_identity,
                                   single_buffer_weights)

    out_f = pl.pallas_call(
        kernel,
        out_shape=jax.ShapeDtypeStruct((rows, Of), x.dtype),
        grid_spec=pltpu.PrefetchScalarGridSpec(
            num_scalar_prefetch=0,
            grid=grid,
            in_specs=in_specs,
            out_specs=pl.BlockSpec((tile_rows, Of), lambda i: (i, 0)),
        ),
        compiler_params=pltpu.CompilerParams(
            dimension_semantics=("parallel",),
            vmem_limit_bytes=vmem_limit,
        ),
    )(*operands)

    out = out_f.reshape(Mp, O)
    if Mp != M:
        out = out[:M]
    return out.reshape(leading + (O,))


class FFNPallas:
    """FFN with identity connection.  Weight folding / bf16 casting is done
    ONCE here (parameter-load time), not on every forward call."""

    def __init__(self, w1, b1, w2, b2, *, add_identity=True, tile_m=2048,
                 min_steps=2, mxu_dtype=jnp.bfloat16, fold_lanes=True,
                 max_fold=8, single_buffer_weights=True):
        assert tile_m % 8 == 0, "tile_m must be a multiple of 8"
        E, F = w1.shape
        F2, O = w2.shape
        assert F2 == F and b1.shape == (F,) and b2.shape == (O,)
        r = _lane_fold_factor(E, O) if fold_lanes else 1
        if r > max_fold:
            r = 1  # kron(I_r, W) grows weight bytes by r^2; fall back unfolded
        self.E, self.F, self.O, self.r = E, F, O, r
        self.add_identity = add_identity
        self.tile_m = tile_m
        self.min_steps = min_steps
        self.single_buffer_weights = single_buffer_weights
        # One-time fold + cast (kron is exact: extra terms are exact zeros).
        w1f = _block_diag(jnp.asarray(w1), r).astype(mxu_dtype)
        w2f = _block_diag(jnp.asarray(w2), r).astype(mxu_dtype)
        b1f = jnp.tile(jnp.asarray(b1, jnp.float32), r).reshape(1, r * F)
        b2f = jnp.tile(jnp.asarray(b2, jnp.float32), r).reshape(1, r * O)
        self.w1f, self.w2f, self.b1f, self.b2f = jax.block_until_ready(
            (w1f, w2f, b1f, b2f))

    def __call__(self, x, identity=None):
        return _ffn_forward(
            x, self.w1f, self.b1f, self.w2f, self.b2f, identity,
            r=self.r, add_identity=self.add_identity, tile_m=self.tile_m,
            min_steps=self.min_steps,
            single_buffer_weights=self.single_buffer_weights)


def ffn_pallas(x, w1, b1, w2, b2, identity=None, **kwargs):
    """One-shot convenience.  For repeated calls build FFNPallas once."""
    return FFNPallas(w1, b1, w2, b2, **kwargs)(x, identity)


# ----------------------------- references -------------------------------------
def _ffn_reference(x, w1, b1, w2, b2, identity=None, add_identity=True):
    """Pure f32 reference (module semantics)."""
    h = jnp.maximum(jnp.dot(x, w1) + b1, 0.0)
    y = jnp.dot(h, w2) + b2
    if add_identity:
        y = y + (x if identity is None else identity)
    return y


def _ffn_reference_mixed(x, w1, b1, w2, b2, identity=None, add_identity=True,
                         mxu_dtype=jnp.bfloat16):
    """Reference with the same bf16-operand / f32-accumulate mixed precision."""
    h = jnp.dot(x.astype(mxu_dtype), w1.astype(mxu_dtype),
                preferred_element_type=jnp.float32)
    h = jnp.maximum(h + b1, 0.0)
    y = jnp.dot(h.astype(mxu_dtype), w2.astype(mxu_dtype),
                preferred_element_type=jnp.float32) + b2
    if add_identity:
        y = y + (x if identity is None else identity)
    return y


def _check(out, x, w1, b1, w2, b2, identity=None, add_identity=True, name="",
           atol_mx=1e-4, rtol_mx=1e-4, atol_f32=5e-2, rtol_f32=5e-2):
    xf = x.astype(jnp.float32)
    idf = None if identity is None else identity.astype(jnp.float32)
    ref32 = _ffn_reference(xf, w1, b1, w2, b2, idf, add_identity)
    refmx = _ffn_reference_mixed(xf, w1, b1, w2, b2, idf, add_identity)
    of = out.astype(jnp.float32)
    assert out.shape == ref32.shape, f"{name}: wrong output shape {out.shape}"
    assert jnp.allclose(of, refmx, atol=atol_mx, rtol=rtol_mx), \
        f"{name}: mismatch vs mixed-precision reference"
    assert jnp.allclose(of, ref32, atol=atol_f32, rtol=rtol_f32), \
        f"{name}: mismatch vs f32 reference"


if __name__ == "__main__":
    # Small config consistent with the module: embed_dim=32, feedforward_dim=128
    batch, seq, embed_dim, ffn_dim = 2, 8, 32, 128
    output_dim = embed_dim  # default: output_dim = embed_dim

    key = jax.random.PRNGKey(0)
    kx, kw1, kb1, kw2, kb2, kid, kx2 = jax.random.split(key, 7)

    x = jax.random.normal(kx, (batch, seq, embed_dim), dtype=jnp.float32)
    # Weights stored [in, out] (= torch W.T); deterministic "xavier-ish" init.
    w1 = jax.random.normal(kw1, (embed_dim, ffn_dim), dtype=jnp.float32) * 0.05
    b1 = jax.random.normal(kb1, (ffn_dim,), dtype=jnp.float32) * 0.01
    w2 = jax.random.normal(kw2, (ffn_dim, output_dim), dtype=jnp.float32) * 0.05
    b2 = jax.random.normal(kb2, (output_dim,), dtype=jnp.float32) * 0.01

    # Build once: weight folding / bf16 cast hoisted out of the per-call path.
    try:
        ffn = FFNPallas(w1, b1, w2, b2)
        out1 = jax.block_until_ready(ffn(x))
    except Exception:
        # Fallback for jax builds where single-buffered (pl.Buffered(1))
        # resident-weight specs are rejected at lowering time.
        ffn = FFNPallas(w1, b1, w2, b2, single_buffer_weights=False)
        out1 = jax.block_until_ready(ffn(x))

    # 1) Default path: identity=None -> residual reuses the x tile.
    _check(out1, x, w1, b1, w2, b2, name="default")

    # 2) Explicit identity tensor (separate-identity kernel variant).
    ident = jax.random.normal(kid, (batch, seq, output_dim), dtype=jnp.float32)
    out2 = jax.block_until_ready(ffn(x, ident))
    _check(out2, x, w1, b1, w2, b2, identity=ident, name="explicit-identity")

    # 3) Larger run exercising multiple (parallel) grid steps.
    xl = jax.random.normal(kx2, (2, 2048, embed_dim), dtype=jnp.float32)
    out3 = jax.block_until_ready(ffn(xl))
    _check(out3, xl, w1, b1, w2, b2, name="multi-tile")

    # 4) bf16 activation streaming (bf16 in / bf16 out), f32 math inside.
    xb = xl.astype(jnp.bfloat16)
    out4 = jax.block_until_ready(ffn(xb))
    assert out4.dtype == jnp.bfloat16
    _check(out4, xb, w1, b1, w2, b2, name="bf16-stream",
           atol_mx=5e-2, rtol_mx=5e-2, atol_f32=1e-1, rtol_f32=1e-1)

    print("KERNEL_OK")
</pallas_src>

<mosaic_0001>
module attributes {stable_mosaic.version = 11 : i64} {
  func.func @kernel(%arg0: i32, %arg1: memref<4x128xf32, #tpu.memory_space<vmem>>, %arg2: memref<128x512xbf16, #tpu.memory_space<vmem>>, %arg3: memref<1x512xf32, #tpu.memory_space<vmem>>, %arg4: memref<512x128xbf16, #tpu.memory_space<vmem>>, %arg5: memref<1x128xf32, #tpu.memory_space<vmem>>, %arg6: memref<4x128xf32, #tpu.memory_space<vmem>>) attributes {dimension_semantics = [#tpu.dimension_semantics<parallel>], iteration_bounds = array<i64: 1>, scalar_prefetch = 0 : i64, scratch_operands = 0 : i64, tpu.core_type = #tpu.core_type<tc>, window_params = [{transform_indices = @transform_0, window_bounds = array<i64: 4, 128>}, {pipeline_mode = #tpu.pipeline_mode<synchronous>, transform_indices = @transform_1, window_bounds = array<i64: 128, 512>}, {pipeline_mode = #tpu.pipeline_mode<synchronous>, transform_indices = @transform_2, window_bounds = array<i64: 1, 512>}, {pipeline_mode = #tpu.pipeline_mode<synchronous>, transform_indices = @transform_3, window_bounds = array<i64: 512, 128>}, {pipeline_mode = #tpu.pipeline_mode<synchronous>, transform_indices = @transform_4, window_bounds = array<i64: 1, 128>}, {transform_indices = @transform_5, window_bounds = array<i64: 4, 128>}]} {
    %c0 = arith.constant 0 : index
    %c0_0 = arith.constant 0 : index
    %0 = vector.load %arg1[%c0, %c0_0] : memref<4x128xf32, #tpu.memory_space<vmem>>, vector<4x128xf32>
    %1 = arith.truncf %0 : vector<4x128xf32> to vector<4x128xbf16>
    %c0_1 = arith.constant 0 : index
    %c0_2 = arith.constant 0 : index
    %2 = vector.load %arg2[%c0_1, %c0_2] : memref<128x512xbf16, #tpu.memory_space<vmem>>, vector<128x512xbf16>
    %cst = arith.constant dense<0.000000e+00> : vector<4x512xf32>
    %3 = tpu.matmul %1, %2, %cst {dimension_numbers = #tpu.dot_dimension_numbers<[1], [0], [0], [1], [0, 0, 1, 1], [], []>} : vector<4x128xbf16>, vector<128x512xbf16>, vector<4x512xf32> -> vector<4x512xf32>
    %c0_3 = arith.constant 0 : index
    %c0_4 = arith.constant 0 : index
    %4 = vector.load %arg3[%c0_3, %c0_4] : memref<1x512xf32, #tpu.memory_space<vmem>>, vector<1x512xf32>
    %5 = vector.broadcast %4 : vector<1x512xf32> to vector<4x512xf32>
    %6 = arith.addf %3, %5 : vector<4x512xf32>
    %cst_5 = arith.constant 0.000000e+00 : f32
    %7 = vector.broadcast %cst_5 : f32 to vector<4x512xf32>
    %8 = arith.maximumf %6, %7 : vector<4x512xf32>
    %9 = arith.truncf %8 : vector<4x512xf32> to vector<4x512xbf16>
    %c0_6 = arith.constant 0 : index
    %c0_7 = arith.constant 0 : index
    %10 = vector.load %arg4[%c0_6, %c0_7] : memref<512x128xbf16, #tpu.memory_space<vmem>>, vector<512x128xbf16>
    %cst_8 = arith.constant dense<0.000000e+00> : vector<4x128xf32>
    %11 = tpu.matmul %9, %10, %cst_8 {dimension_numbers = #tpu.dot_dimension_numbers<[1], [0], [0], [1], [0, 0, 1, 1], [], []>} : vector<4x512xbf16>, vector<512x128xbf16>, vector<4x128xf32> -> vector<4x128xf32>
    %c0_9 = arith.constant 0 : index
    %c0_10 = arith.constant 0 : index
    %12 = vector.load %arg5[%c0_9, %c0_10] : memref<1x128xf32, #tpu.memory_space<vmem>>, vector<1x128xf32>
    %13 = vector.broadcast %12 : vector<1x128xf32> to vector<4x128xf32>
    %14 = arith.addf %11, %13 : vector<4x128xf32>
    %15 = arith.addf %14, %0 : vector<4x128xf32>
    %c0_11 = arith.constant 0 : index
    %c0_12 = arith.constant 0 : index
    %16 = vector.load %arg6[%c0_11, %c0_12] : memref<4x128xf32, #tpu.memory_space<vmem>>, vector<4x128xf32>
    tpu.vector_store %arg6[%c0_11, %c0_12], %15 {strides = array<i32>} : memref<4x128xf32, #tpu.memory_space<vmem>>, vector<4x128xf32>,
    return
  }
  func.func @transform_0(%arg0: i32) -> (i32, i32) {
    %c0_i32 = arith.constant 0 : i32
    %c0_i32_0 = arith.constant 0 : i32
    return %arg0, %c0_i32 : i32, i32
  }
  func.func @transform_1(%arg0: i32) -> (i32, i32) {
    %c0_i32 = arith.constant 0 : i32
    %c0_i32_0 = arith.constant 0 : i32
    %c0_i32_1 = arith.constant 0 : i32
    return %c0_i32, %c0_i32_0 : i32, i32
  }
  func.func @transform_2(%arg0: i32) -> (i32, i32) {
    %c0_i32 = arith.constant 0 : i32
    %c0_i32_0 = arith.constant 0 : i32
    %c0_i32_1 = arith.constant 0 : i32
    return %c0_i32, %c0_i32_0 : i32, i32
  }
  func.func @transform_3(%arg0: i32) -> (i32, i32) {
    %c0_i32 = arith.constant 0 : i32
    %c0_i32_0 = arith.constant 0 : i32
    %c0_i32_1 = arith.constant 0 : i32
    return %c0_i32, %c0_i32_0 : i32, i32
  }
  func.func @transform_4(%arg0: i32) -> (i32, i32) {
    %c0_i32 = arith.constant 0 : i32
    %c0_i32_0 = arith.constant 0 : i32
    %c0_i32_1 = arith.constant 0 : i32
    return %c0_i32, %c0_i32_0 : i32, i32
  }
  func.func @transform_5(%arg0: i32) -> (i32, i32) {
    %c0_i32 = arith.constant 0 : i32
    %c0_i32_0 = arith.constant 0 : i32
    return %arg0, %c0_i32 : i32, i32
  }
}

module attributes {stable_mosaic.version = 11 : i64} {
  func.func @kernel(%arg0: i32, %arg1: memref<4x128xf32, #tpu.memory_space<vmem>>, %arg2: memref<128x512xbf16, #tpu.memory_space<vmem>>, %arg3: memref<1x512xf32, #tpu.memory_space<vmem>>, %arg4: memref<512x128xbf16, #tpu.memory_space<vmem>>, %arg5: memref<1x128xf32, #tpu.memory_space<vmem>>, %arg6: memref<4x128xf32, #tpu.memory_space<vmem>>) attributes {dimension_semantics = [#tpu.dimension_semantics<parallel>], iteration_bounds = array<i64: 1>, scalar_prefetch = 0 : i64, scratch_operands = 0 : i64, tpu.core_type = #tpu.core_type<tc>, window_params = [{transform_indices = @transform_0, window_bounds = array<i64: 4, 128>}, {pipeline_mode = #tpu.pipeline_mode<synchronous>, transform_indices = @transform_1, window_bounds = array<i64: 128, 512>}, {pipeline_mode = #tpu.pipeline_mode<synchronous>, transform_indices = @transform_2, window_bounds = array<i64: 1, 512>}, {pipeline_mode = #tpu.pipeline_mode<synchronous>, transform_indices = @transform_3, window_bounds = array<i64: 512, 128>}, {pipeline_mode = #tpu.pipeline_mode<synchronous>, transform_indices = @transform_4, window_bounds = array<i64: 1, 128>}, {transform_indices = @transform_5, window_bounds = array<i64: 4, 128>}]} {
    %c0 = arith.constant 0 : index
    %c0_0 = arith.constant 0 : index
    %0 = vector.load %arg1[%c0, %c0_0] : memref<4x128xf32, #tpu.memory_space<vmem>>, vector<4x128xf32>
    %1 = arith.truncf %0 : vector<4x128xf32> to vector<4x128xbf16>
    %c0_1 = arith.constant 0 : index
    %c0_2 = arith.constant 0 : index
    %2 = vector.load %arg2[%c0_1, %c0_2] : memref<128x512xbf16, #tpu.memory_space<vmem>>, vector<128x512xbf16>
    %cst = arith.constant dense<0.000000e+00> : vector<4x512xf32>
    %3 = tpu.matmul %1, %2, %cst {dimension_numbers = #tpu.dot_dimension_numbers<[1], [0], [0], [1], [0, 0, 1, 1], [], []>} : vector<4x128xbf16>, vector<128x512xbf16>, vector<4x512xf32> -> vector<4x512xf32>
    %c0_3 = arith.constant 0 : index
    %c0_4 = arith.constant 0 : index
    %4 = vector.load %arg3[%c0_3, %c0_4] : memref<1x512xf32, #tpu.memory_space<vmem>>, vector<1x512xf32>
    %5 = vector.broadcast %4 : vector<1x512xf32> to vector<4x512xf32>
    %6 = arith.addf %3, %5 : vector<4x512xf32>
    %cst_5 = arith.constant 0.000000e+00 : f32
    %7 = vector.broadcast %cst_5 : f32 to vector<4x512xf32>
    %8 = arith.maximumf %6, %7 : vector<4x512xf32>
    %9 = arith.truncf %8 : vector<4x512xf32> to vector<4x512xbf16>
    %c0_6 = arith.constant 0 : index
    %c0_7 = arith.constant 0 : index
    %10 = vector.load %arg4[%c0_6, %c0_7] : memref<512x128xbf16, #tpu.memory_space<vmem>>, vector<512x128xbf16>
    %cst_8 = arith.constant dense<0.000000e+00> : vector<4x128xf32>
    %11 = tpu.matmul %9, %10, %cst_8 {dimension_numbers = #tpu.dot_dimension_numbers<[1], [0], [0], [1], [0, 0, 1, 1], [], []>} : vector<4x512xbf16>, vector<512x128xbf16>, vector<4x128xf32> -> vector<4x128xf32>
    %c0_9 = arith.constant 0 : index
    %c0_10 = arith.constant 0 : index
    %12 = vector.load %arg5[%c0_9, %c0_10] : memref<1x128xf32, #tpu.memory_space<vmem>>, vector<1x128xf32>
    %13 = vector.broadcast %12 : vector<1x128xf32> to vector<4x128xf32>
    %14 = arith.addf %11, %13 : vector<4x128xf32>
    %15 = arith.addf %14, %0 : vector<4x128xf32>
    %c0_11 = arith.constant 0 : index
    %c0_12 = arith.constant 0 : index
    %16 = vector.load %arg6[%c0_11, %c0_12] : memref<4x128xf32, #tpu.memory_space<vmem>>, vector<4x128xf32>
    tpu.vector_store %arg6[%c0_11, %c0_12], %15 {strides = array<i32>} : memref<4x128xf32, #tpu.memory_space<vmem>>, vector<4x128xf32>,
    return
  }
  func.func @transform_0(%arg0: i32) -> (i32, i32) {
    %c0_i32 = arith.constant 0 : i32
    %c0_i32_0 = arith.constant 0 : i32
    return %arg0, %c0_i32 : i32, i32
  }
  func.func @transform_1(%arg0: i32) -> (i32, i32) {
    %c0_i32 = arith.constant 0 : i32
    %c0_i32_0 = arith.constant 0 : i32
    %c0_i32_1 = arith.constant 0 : i32
    return %c0_i32, %c0_i32_0 : i32, i32
  }
  func.func @transform_2(%arg0: i32) -> (i32, i32) {
    %c0_i32 = arith.constant 0 : i32
    %c0_i32_0 = arith.constant 0 : i32
    %c0_i32_1 = arith.constant 0 : i32
    return %c0_i32, %c0_i32_0 : i32, i32
  }
  func.func @transform_3(%arg0: i32) -> (i32, i32) {
    %c0_i32 = arith.constant 0 : i32
    %c0_i32_0 = arith.constant 0 : i32
    %c0_i32_1 = arith.constant 0 : i32
    return %c0_i32, %c0_i32_0 : i32, i32
  }
  func.func @transform_4(%arg0: i32) -> (i32, i32) {
    %c0_i32 = arith.constant 0 : i32
    %c0_i32_0 = arith.constant 0 : i32
    %c0_i32_1 = arith.constant 0 : i32
    return %c0_i32, %c0_i32_0 : i32, i32
  }
  func.func @transform_5(%arg0: i32) -> (i32, i32) {
    %c0_i32 = arith.constant 0 : i32
    %c0_i32_0 = arith.constant 0 : i32
    return %arg0, %c0_i32 : i32, i32
  }
}

</mosaic_0001>

<bundles_post_ra>
// kernel: _ffn_forward.1
= control target key start
LH: loop header
LB: loop body
LE: loop exit
PB: predicated region body
PF: predicated region fallthrough
CT: control target
= control target key end

     0   :  { %10 = vsyncpa [#allocation3], 0  ;;  %s1028_s0 = inlined_call_operand.vmem [shape: f32[4,128], index: 0, kind: input, shape index: {}]   ;;  %s1029_s1 = inlined_call_operand.hbm [shape: bf16[128,512], index: 1, kind: input, shape index: {}]   ;;  %s1030_s2 = inlined_call_operand.vmem [shape: f32[1,512], index: 2, kind: input, shape index: {}]   ;;  %s1031_s3 = inlined_call_operand.hbm [shape: bf16[512,128], index: 3, kind: input, shape index: {}]   ;;  %s1032_s4 = inlined_call_operand.vmem [shape: f32[1,128], index: 4, kind: input, shape index: {}]   ;;  %s1033_s5 = inlined_call_operand.vmem [shape: f32[4,128], index: 5, kind: output, shape index: {}]  }
   0x1   :  { %11 = vsyncpa [#allocation5], 0  ;;  %s950_s18 = smov [#allocation2]   ;;  %s902_s22 = scalar_lea.hbm %s1029_s1, 4096 }
   0x2   :  { %s19_s19 = sshll.u32 %s950_s18, 4  ;;  %p903_p0 = scmp.ne.s32.totalorder %s1029_s1, %s902_s22  ;;  %s20_s19 = int_to_ptr.vmem [resolvable:$true] %s19_s19 }
   0x3   :  { %p906_p1 = scmp.lt.u32.totalorder %s902_s22, %s1029_s1 }
   0x5   :  { %p908_p2 = pnand %p906_p1, %p903_p0 }
   0x7   :  { %911 = shalt.err (!%p908_p2)
}
   0x8   :  { %s912_s27 = scalar_lea.vmem %s20_s19, 4096  ;;  %p917_p4 = scmp.lt.s32.totalorder %s20_s19, %s20_s19 }
   0x9   :  { %p913_p3 = scmp.ne.s32.totalorder %s20_s19, %s912_s27  ;;  %p918_p5 = scmp.lt.s32.totalorder %s912_s27, %s912_s27 }
   0xb   :  { %p919_p6 = por %p918_p5, %p917_p4 }
   0xd   :  { %p920_p7 = pnand %p919_p6, %p913_p3 }
   0xf   :  { %923 = shalt.err (!%p920_p7)
}
  0x10   :  { %s951_s28 = smov 256   ;;  %s952_s29 = smov 16  }
  0x11   :  { %25 = dma.hbm_to_vmem [thread:$0]  %s1029_s1, 4096, %s20_s19, [#allocation3], %s951_s28, %s951_s28, %s952_s29  }
  0x12   :  { %s953_s7 = smov [#allocation4]   ;;  %s924_s11 = scalar_lea.hbm %s1031_s3, 4096 }
  0x13   :  { %s33_s8 = sshll.u32 %s953_s7, 4  ;;  %p925_p8 = scmp.ne.s32.totalorder %s1031_s3, %s924_s11  ;;  %s34_s8 = int_to_ptr.vmem [resolvable:$true] %s33_s8 }
  0x14   :  { %p928_p9 = scmp.lt.u32.totalorder %s924_s11, %s1031_s3 }
  0x16   :  { %p930_p10 = pnand %p928_p9, %p925_p8 }
  0x18   :  { %933 = shalt.err (!%p930_p10)
}
  0x19   :  { %s934_s16 = scalar_lea.vmem %s34_s8, 4096  ;;  %p939_p12 = scmp.lt.s32.totalorder %s34_s8, %s34_s8 }
  0x1a   :  { %p935_p11 = scmp.ne.s32.totalorder %s34_s8, %s934_s16  ;;  %p940_p13 = scmp.lt.s32.totalorder %s934_s16, %s934_s16 }
  0x1c   :  { %p941_p0 = por %p940_p13, %p939_p12 }
  0x1e   :  { %p942_p1 = pnand %p941_p0, %p935_p11 }
  0x20   :  { %945 = shalt.err (!%p942_p1)
}
  0x21   :  { %s954_s1 = smov 64   ;;  %s955_s17 = smov 4  }
  0x22   :  { %39 = dma.hbm_to_vmem [thread:$0]  %s1031_s3, 4096, %s34_s8, [#allocation5], %s954_s1, %s954_s1, %s955_s17  }
  0x23   :  { %946 = dma.done.wait [#allocation3], 4096  }
  0x24   :  { %947 = vsyncadd [#allocation3], 4294963200 }
  0x25   :  { %948 = dma.done.wait [#allocation5], 4096  }
  0x26   :  { %949 = vsyncadd [#allocation5], 4294963200  ;;  %v956_v0 = vmov 0   ;;  %v822_v1 = vld [vmem:[#allocation2 + $0x4] ss:$16 sps:$4 sm:$0xff]   ;;  %v874_v39 = vld [vmem:[#allocation4 + $0x48] sm:$0xff]  }
  0x27   :  { %297 = vmatprep.mubr.bf16.mxu0 %v956_v0  ;;  %338 = vmatprep.mubr.bf16.mxu1 %v956_v0  ;;  %v824_v2 = vld [vmem:[#allocation2 + $0xc] ss:$16 sps:$4 sm:$0xff]   ;;  %v826_v3 = vld [vmem:[#allocation2] ss:$16 sps:$4 sm:$0xff]   ;;  %v827_v4 = vld [vmem:[#allocation2 + $0x8] ss:$16 sps:$4 sm:$0xff]  }
  0x28   :  { %265 = vmatprep.subr.bf16.mxu0 %v822_v1  ;;  %306 = vmatprep.subr.bf16.mxu1 %v824_v2  ;;  %v828_v5 = vld [vmem:[#allocation2 + $0x24] ss:$16 sps:$4 sm:$0xff]   ;;  %v830_v6 = vld [vmem:[#allocation2 + $0x2c] ss:$16 sps:$4 sm:$0xff]   ;;  %v832_v7 = vld [vmem:[#allocation2 + $0x20] ss:$16 sps:$4 sm:$0xff]  }
  0x29   :  { %266 = vmatpush1.bf16.msra.mxu0 %v826_v3  ;;  %307 = vmatpush1.bf16.msra.mxu1 %v827_v4  ;;  %v833_v8 = vld [vmem:[#allocation2 + $0x28] ss:$16 sps:$4 sm:$0xff]   ;;  %v834_v9 = vld [vmem:[#allocation2 + $0x44] ss:$16 sps:$4 sm:$0xff]   ;;  %v836_v10 = vld [vmem:[#allocation2 + $0x4c] ss:$16 sps:$4 sm:$0xff]   ;;  %v85_v3 = vlaneseq }
  0x2a   :  { %267 = vmatprep.subr.bf16.mxu0 %v828_v5  ;;  %308 = vmatprep.subr.bf16.mxu1 %v830_v6  ;;  %v838_v11 = vld [vmem:[#allocation2 + $0x40] ss:$16 sps:$4 sm:$0xff]   ;;  %v839_v12 = vld [vmem:[#allocation2 + $0x48] ss:$16 sps:$4 sm:$0xff]   ;;  %v840_v13 = vld [vmem:[#allocation2 + $0x64] ss:$16 sps:$4 sm:$0xff]  }
  0x2b   :  { %v842_v14 = vld [vmem:[#allocation2 + $0x6c] ss:$16 sps:$4 sm:$0xff]   ;;  %v844_v15 = vld [vmem:[#allocation2 + $0x60] ss:$16 sps:$4 sm:$0xff]   ;;  %v845_v16 = vld [vmem:[#allocation2 + $0x68] ss:$16 sps:$4 sm:$0xff]  }
  0x2c   :  { %v846_v17 = vld [vmem:[#allocation2 + $0x84] ss:$16 sps:$4 sm:$0xff]   ;;  %v848_v18 = vld [vmem:[#allocation2 + $0x8c] ss:$16 sps:$4 sm:$0xff]   ;;  %v850_v19 = vld [vmem:[#allocation2 + $0x80] ss:$16 sps:$4 sm:$0xff]  }
  0x2d   :  { %268 = vmatpush1.bf16.msra.mxu0 %v832_v7  ;;  %309 = vmatpush1.bf16.msra.mxu1 %v833_v8  ;;  %v851_v20 = vld [vmem:[#allocation2 + $0x88] ss:$16 sps:$4 sm:$0xff]   ;;  %v852_v21 = vld [vmem:[#allocation2 + $0xa4] ss:$16 sps:$4 sm:$0xff]   ;;  %v854_v22 = vld [vmem:[#allocation2 + $0xac] ss:$16 sps:$4 sm:$0xff]  }
  0x2e   :  { %269 = vmatprep.subr.bf16.mxu0 %v834_v9  ;;  %310 = vmatprep.subr.bf16.mxu1 %v836_v10  ;;  %v856_v23 = vld [vmem:[#allocation2 + $0xa0] ss:$16 sps:$4 sm:$0xff]   ;;  %v857_v24 = vld [vmem:[#allocation2 + $0xa8] ss:$16 sps:$4 sm:$0xff]   ;;  %v858_v25 = vld [vmem:[#allocation2 + $0xc4] ss:$16 sps:$4 sm:$0xff]  }
  0x2f   :  { %v860_v26 = vld [vmem:[#allocation2 + $0xcc] ss:$16 sps:$4 sm:$0xff]   ;;  %v862_v27 = vld [vmem:[#allocation2 + $0xc0] ss:$16 sps:$4 sm:$0xff]   ;;  %v863_v28 = vld [vmem:[#allocation2 + $0xc8] ss:$16 sps:$4 sm:$0xff]  }
  0x30   :  { %v864_v29 = vld [vmem:[#allocation2 + $0xe4] ss:$16 sps:$4 sm:$0xff]   ;;  %v866_v30 = vld [vmem:[#allocation2 + $0xec] ss:$16 sps:$4 sm:$0xff]   ;;  %v868_v31 = vld [vmem:[#allocation2 + $0xe0] ss:$16 sps:$4 sm:$0xff]  }
  0x31   :  { %270 = vmatpush1.bf16.msra.mxu0 %v838_v11  ;;  %311 = vmatpush1.bf16.msra.mxu1 %v839_v12  ;;  %v869_v32 = vld [vmem:[#allocation2 + $0xe8] ss:$16 sps:$4 sm:$0xff]   ;;  %v1014_v33 = vld [vmem:[%s1028_s0] sm:$0xf]  ;;  %v878_v43 = vld [vmem:[#allocation4 + $0x50] sm:$0xff]   ;;  %v86_v4 = vshrl.u32 %v85_v3, 7 }
  0x32   :  { %271 = vmatprep.subr.bf16.mxu0 %v840_v13  ;;  %312 = vmatprep.subr.bf16.mxu1 %v842_v14  ;;  %v870_v34 = vld [vmem:[#allocation4 + $0x40] sm:$0xff]   ;;  %v50_v37 = vpack.c.bf16 %v1014_v33, %v1014_v33  ;;  %v875_v40 = vld [vmem:[#allocation4 + $0xc8] sm:$0xff]   ;;  %v879_v44 = vld [vmem:[#allocation4 + $0xd0] sm:$0xff]  }
  0x33   :  { %v871_v35 = vld [vmem:[#allocation4 + $0xc0] sm:$0xff]   ;;  %v876_v41 = vld [vmem:[#allocation4 + $0x8] sm:$0xff]   ;;  %v880_v45 = vld [vmem:[#allocation4 + $0x10] sm:$0xff]   ;;  %v87_v5 = vsub.s32 0, %v86_v4  ;;  %v95_v6 = vsub.s32 2, %v86_v4  ;;  %v91_v8 = vsub.s32 1, %v86_v4 }
  0x34   :  { %v872_v36 = vld [vmem:[#allocation4] sm:$0xff]   ;;  %v877_v42 = vld [vmem:[#allocation4 + $0x88] sm:$0xff]   ;;  %v881_v46 = vld [vmem:[#allocation4 + $0x90] sm:$0xff]   ;;  %v99_v9 = vsub.s32 3, %v86_v4 }
  0x35   :  { %272 = vmatpush1.bf16.msra.mxu0 %v844_v15  ;;  %313 = vmatpush1.bf16.msra.mxu1 %v845_v16  ;;  %v873_v38 = vld [vmem:[#allocation4 + $0x80] sm:$0xff]   ;;  %v882_v47 = vld [vmem:[#allocation4 + $0x58] sm:$0xff]   ;;  %v890_v55 = vld [vmem:[#allocation4 + $0x68] sm:$0xff]  }
  0x36   :  { %273 = vmatprep.subr.bf16.mxu0 %v846_v17  ;;  %314 = vmatprep.subr.bf16.mxu1 %v848_v18  ;;  %v883_v48 = vld [vmem:[#allocation4 + $0xd8] sm:$0xff]   ;;  %v886_v51 = vld [vmem:[#allocation4 + $0x60] sm:$0xff]   ;;  %v891_v56 = vld [vmem:[#allocation4 + $0xe8] sm:$0xff]  }
  0x37   :  { %v884_v49 = vld [vmem:[#allocation4 + $0x18] sm:$0xff]   ;;  %v887_v52 = vld [vmem:[#allocation4 + $0xe0] sm:$0xff]   ;;  %v892_v57 = vld [vmem:[#allocation4 + $0x28] sm:$0xff]  }
  0x38   :  { %v885_v50 = vld [vmem:[#allocation4 + $0x98] sm:$0xff]   ;;  %v888_v53 = vld [vmem:[#allocation4 + $0x20] sm:$0xff]   ;;  %v893_v58 = vld [vmem:[#allocation4 + $0xa8] sm:$0xff]  }
  0x39   :  { %274 = vmatpush1.bf16.msra.mxu0 %v850_v19  ;;  %315 = vmatpush1.bf16.msra.mxu1 %v851_v20  ;;  %v889_v54 = vld [vmem:[#allocation4 + $0xa0] sm:$0xff]   ;;  %v894_v59 = vld [vmem:[#allocation4 + $0x70] sm:$0xff]   ;;  %v898_v63 = vld [vmem:[#allocation4 + $0x78] sm:$0xff]  }
  0x3a   :  { %275 = vmatprep.subr.bf16.mxu0 %v852_v21  ;;  %316 = vmatprep.subr.bf16.mxu1 %v854_v22  ;;  %v895_v60 = vld [vmem:[#allocation4 + $0xf0] sm:$0xff]   ;;  %v899_v0 = vld [vmem:[#allocation4 + $0xf8] sm:$0xff]   ;;  %v83_v7 = vld [vmem:[%s1030_s2] sm:$0xf] }
  0x3b   :  { %v896_v61 = vld [vmem:[#allocation4 + $0x30] sm:$0xff]   ;;  %v900_v1 = vld [vmem:[#allocation4 + $0x38] sm:$0xff]   ;;  %v88_v10 = vrot.slane %v83_v7, %v87_v5  ;;  %v96_v11 = vrot.slane %v83_v7, %v95_v6  ;;  %v92_v12 = vrot.slane %v83_v7, %v91_v8  ;;  %v100_v13 = vrot.slane %v83_v7, %v99_v9 }
  0x3c   :  { %v897_v62 = vld [vmem:[#allocation4 + $0xb0] sm:$0xff]   ;;  %v901_v2 = vld [vmem:[#allocation4 + $0xb8] sm:$0xff]  }
  0x3d   :  { %276 = vmatpush1.bf16.msra.mxu0 %v856_v23  ;;  %317 = vmatpush1.bf16.msra.mxu1 %v857_v24 }
  0x3e   :  { %277 = vmatprep.subr.bf16.mxu0 %v858_v25  ;;  %318 = vmatprep.subr.bf16.mxu1 %v860_v26 }
  0x41   :  { %278 = vmatpush1.bf16.msra.mxu0 %v862_v27  ;;  %319 = vmatpush1.bf16.msra.mxu1 %v863_v28 }
  0x42   :  { %279 = vmatprep.subr.bf16.mxu0 %v864_v29  ;;  %320 = vmatprep.subr.bf16.mxu1 %v866_v30 }
  0x45   :  { %280 = vmatpush1.bf16.msra.mxu0 %v868_v31  ;;  %321 = vmatpush1.bf16.msra.mxu1 %v869_v32 }
  0x46   :  { %771 = vmatprep.subr.bf16.mxu0 %v870_v34  ;;  %793 = vmatprep.subr.bf16.mxu1 %v871_v35 }
  0x48   :  { %298 = vmatmul.mubr.bf16.vlgmr.msra.gmra.mrb[0].mxu0 %v50_v37  ;;  %339 = vmatmul.mubr.bf16.vlgmr.msra.gmra.mrb[0].mxu1 %v50_v37  ;;  %v738_v37 = vld [vmem:[%s1032_s4] ss:$0 sm:$0xff] }
  0x49   :  { %772 = vmatpush3.bf16.msra.mxu0 %v872_v36  ;;  %794 = vmatpush3.bf16.msra.mxu1 %v873_v38 }
  0x4a   :  { %773 = vmatprep.subr.bf16.mxu0 %v874_v39  ;;  %795 = vmatprep.subr.bf16.mxu1 %v875_v40 }
  0x4d   :  { %774 = vmatpush3.bf16.msra.mxu0 %v876_v41  ;;  %796 = vmatpush3.bf16.msra.mxu1 %v877_v42 }
  0x4e   :  { %775 = vmatprep.subr.bf16.mxu0 %v878_v43  ;;  %797 = vmatprep.subr.bf16.mxu1 %v879_v44 }
  0x51   :  { %776 = vmatpush3.bf16.msra.mxu0 %v880_v45  ;;  %798 = vmatpush3.bf16.msra.mxu1 %v881_v46 }
  0x52   :  { %777 = vmatprep.subr.bf16.mxu0 %v882_v47  ;;  %799 = vmatprep.subr.bf16.mxu1 %v883_v48 }
  0x55   :  { %778 = vmatpush3.bf16.msra.mxu0 %v884_v49  ;;  %800 = vmatpush3.bf16.msra.mxu1 %v885_v50 }
  0x56   :  { %779 = vmatprep.subr.bf16.mxu0 %v886_v51  ;;  %801 = vmatprep.subr.bf16.mxu1 %v887_v52 }
  0x59   :  { %780 = vmatpush3.bf16.msra.mxu0 %v888_v53  ;;  %802 = vmatpush3.bf16.msra.mxu1 %v889_v54 }
  0x5a   :  { %781 = vmatprep.subr.bf16.mxu0 %v890_v55  ;;  %803 = vmatprep.subr.bf16.mxu1 %v891_v56 }
  0x5d   :  { %782 = vmatpush3.bf16.msra.mxu0 %v892_v57  ;;  %804 = vmatpush3.bf16.msra.mxu1 %v893_v58 }
  0x5e   :  { %783 = vmatprep.subr.bf16.mxu0 %v894_v59  ;;  %805 = vmatprep.subr.bf16.mxu1 %v895_v60 }
  0x61   :  { %784 = vmatpush3.bf16.msra.mxu0 %v896_v61  ;;  %806 = vmatpush3.bf16.msra.mxu1 %v897_v62 }
  0x62   :  { %785 = vmatprep.subr.bf16.mxu0 %v898_v63  ;;  %807 = vmatprep.subr.bf16.mxu1 %v899_v0 }
  0x65   :  { %786 = vmatpush3.bf16.msra.mxu0 %v900_v1  ;;  %808 = vmatpush3.bf16.msra.mxu1 %v901_v2 }
 0x11b   :  { %v299_v14 = vpop.f32.mrb[0].mxu0  ;;  %v340_v15 = vpop.f32.mrb[0].mxu1 }
 0x11c   :  { %v300_v16 = vadd.f32 %v299_v14, %v88_v10  ;;  %v341_v17 = vadd.f32 %v340_v15, %v96_v11  ;;  %v301_v18 = vpop.f32.mrb[1].mxu0  ;;  %v342_v19 = vpop.f32.mrb[1].mxu1 }
 0x11d   :  { %v302_v20 = vadd.f32 %v301_v18, %v92_v12  ;;  %v343_v21 = vadd.f32 %v342_v19, %v100_v13  ;;  %v303_v22 = vpop.f32.mrb[2].mxu0  ;;  %v344_v23 = vpop.f32.mrb[2].mxu1 }
 0x11e   :  { %v347_v24 = vmax.f32 %v300_v16, 0.0  ;;  %v349_v25 = vmax.f32 %v341_v17, 0.0  ;;  %v304_v26 = vpop.f32.mrb[3].mxu0  ;;  %v345_v27 = vpop.f32.mrb[3].mxu1 }
 0x11f   :  { %v348_v28 = vmax.f32 %v302_v20, 0.0  ;;  %v350_v29 = vmax.f32 %v343_v21, 0.0 }
 0x120   :  { %v353_v30 = vpack.c.bf16 %v349_v25, %v349_v25  ;;  %v351_v34 = vpack.c.bf16 %v347_v24, %v347_v24 }
 0x121   :  { %v352_v31 = vpack.c.bf16 %v348_v28, %v348_v28  ;;  %v354_v32 = vpack.c.bf16 %v350_v29, %v350_v29 }
 0x123   :  { %650 = vmatprep.mubr.bf16.mxu0 %v352_v31  ;;  %690 = vmatprep.mubr.bf16.mxu1 %v354_v32 }
 0x124   :  { %651 = vmatmul.mubr.bf16.vlgmr.msra.gmra.mrb[4].mxu0 %v351_v34  ;;  %691 = vmatmul.mubr.bf16.vlgmr.msra.gmra.mrb[4].mxu1 %v353_v30 }
 0x1f7   :  { %v787_v35 = vpop.f32.mrb[4].mxu0  ;;  %v809_v36 = vpop.f32.mrb[4].mxu1 }
 0x1f8   :  { %v788_v38 = vpop.f32.mrb[5].mxu0  ;;  %v810_v39 = vpop.f32.mrb[5].mxu1 }
 0x1f9   :  { %v789_v40 = vadd.f32 %v788_v38, %v787_v35  ;;  %v811_v41 = vadd.f32 %v810_v39, %v809_v36  ;;  %v790_v42 = vpop.f32.mrb[6].mxu0  ;;  %v812_v43 = vpop.f32.mrb[6].mxu1 }
 0x1fa   :  { %v791_v44 = vpop.f32.mrb[7].mxu0  ;;  %v813_v45 = vpop.f32.mrb[7].mxu1 }
 0x1fb   :  { %v653_v46 = vadd.f32 %v789_v40, %v738_v37 }
 0x1fd   :  { %v693_v47 = vadd.f32 %v811_v41, %v653_v46 }
 0x1ff   :  { %v698_v48 = vadd.f32 %v693_v47, %v1014_v33 }
 0x201   :  { %699 = vst [vmem:[%s1033_s5] sm:$0xf] %v698_v48 }
 0x202   :  { %704 = vsyncpa [#allocation3], 1 }
 0x203   :  { %705 = vsyncpa [#allocation5], 1 }

// kernel: _ffn_forward.1
= control target key start
LH: loop header
LB: loop body
LE: loop exit
PB: predicated region body
PF: predicated region fallthrough
CT: control target
= control target key end

     0   :  { %10 = vsyncpa [#allocation3], 0  ;;  %s1028_s0 = inlined_call_operand.vmem [shape: f32[4,128], index: 0, kind: input, shape index: {}]   ;;  %s1029_s1 = inlined_call_operand.hbm [shape: bf16[128,512], index: 1, kind: input, shape index: {}]   ;;  %s1030_s2 = inlined_call_operand.vmem [shape: f32[1,512], index: 2, kind: input, shape index: {}]   ;;  %s1031_s3 = inlined_call_operand.hbm [shape: bf16[512,128], index: 3, kind: input, shape index: {}]   ;;  %s1032_s4 = inlined_call_operand.vmem [shape: f32[1,128], index: 4, kind: input, shape index: {}]   ;;  %s1033_s5 = inlined_call_operand.vmem [shape: f32[4,128], index: 5, kind: output, shape index: {}]  }
   0x1   :  { %11 = vsyncpa [#allocation5], 0  ;;  %s950_s18 = smov [#allocation2]   ;;  %s902_s22 = scalar_lea.hbm %s1029_s1, 4096 }
   0x2   :  { %s19_s19 = sshll.u32 %s950_s18, 4  ;;  %p903_p0 = scmp.ne.s32.totalorder %s1029_s1, %s902_s22  ;;  %s20_s19 = int_to_ptr.vmem [resolvable:$true] %s19_s19 }
   0x3   :  { %p906_p1 = scmp.lt.u32.totalorder %s902_s22, %s1029_s1 }
   0x5   :  { %p908_p2 = pnand %p906_p1, %p903_p0 }
   0x7   :  { %911 = shalt.err (!%p908_p2)
}
   0x8   :  { %s912_s27 = scalar_lea.vmem %s20_s19, 4096  ;;  %p917_p4 = scmp.lt.s32.totalorder %s20_s19, %s20_s19 }
   0x9   :  { %p913_p3 = scmp.ne.s32.totalorder %s20_s19, %s912_s27  ;;  %p918_p5 = scmp.lt.s32.totalorder %s912_s27, %s912_s27 }
   0xb   :  { %p919_p6 = por %p918_p5, %p917_p4 }
   0xd   :  { %p920_p7 = pnand %p919_p6, %p913_p3 }
   0xf   :  { %923 = shalt.err (!%p920_p7)
}
  0x10   :  { %s951_s28 = smov 256   ;;  %s952_s29 = smov 16  }
  0x11   :  { %25 = dma.hbm_to_vmem [thread:$0]  %s1029_s1, 4096, %s20_s19, [#allocation3], %s951_s28, %s951_s28, %s952_s29  }
  0x12   :  { %s953_s7 = smov [#allocation4]   ;;  %s924_s11 = scalar_lea.hbm %s1031_s3, 4096 }
  0x13   :  { %s33_s8 = sshll.u32 %s953_s7, 4  ;;  %p925_p8 = scmp.ne.s32.totalorder %s1031_s3, %s924_s11  ;;  %s34_s8 = int_to_ptr.vmem [resolvable:$true] %s33_s8 }
  0x14   :  { %p928_p9 = scmp.lt.u32.totalorder %s924_s11, %s1031_s3 }
  0x16   :  { %p930_p10 = pnand %p928_p9, %p925_p8 }
  0x18   :  { %933 = shalt.err (!%p930_p10)
}
  0x19   :  { %s934_s16 = scalar_lea.vmem %s34_s8, 4096  ;;  %p939_p12 = scmp.lt.s32.totalorder %s34_s8, %s34_s8 }
  0x1a   :  { %p935_p11 = scmp.ne.s32.totalorder %s34_s8, %s934_s16  ;;  %p940_p13 = scmp.lt.s32.totalorder %s934_s16, %s934_s16 }
  0x1c   :  { %p941_p0 = por %p940_p13, %p939_p12 }
  0x1e   :  { %p942_p1 = pnand %p941_p0, %p935_p11 }
  0x20   :  { %945 = shalt.err (!%p942_p1)
}
  0x21   :  { %s954_s1 = smov 64   ;;  %s955_s17 = smov 4  }
  0x22   :  { %39 = dma.hbm_to_vmem [thread:$0]  %s1031_s3, 4096, %s34_s8, [#allocation5], %s954_s1, %s954_s1, %s955_s17  }
  0x23   :  { %946 = dma.done.wait [#allocation3], 4096  }
  0x24   :  { %947 = vsyncadd [#allocation3], 4294963200 }
  0x25   :  { %948 = dma.done.wait [#allocation5], 4096  }
  0x26   :  { %949 = vsyncadd [#allocation5], 4294963200  ;;  %v956_v0 = vmov 0   ;;  %v822_v1 = vld [vmem:[#allocation2 + $0x4] ss:$16 sps:$4 sm:$0xff]   ;;  %v874_v39 = vld [vmem:[#allocation4 + $0x48] sm:$0xff]  }
  0x27   :  { %297 = vmatprep.mubr.bf16.mxu0 %v956_v0  ;;  %338 = vmatprep.mubr.bf16.mxu1 %v956_v0  ;;  %v824_v2 = vld [vmem:[#allocation2 + $0xc] ss:$16 sps:$4 sm:$0xff]   ;;  %v826_v3 = vld [vmem:[#allocation2] ss:$16 sps:$4 sm:$0xff]   ;;  %v827_v4 = vld [vmem:[#allocation2 + $0x8] ss:$16 sps:$4 sm:$0xff]  }
  0x28   :  { %265 = vmatprep.subr.bf16.mxu0 %v822_v1  ;;  %306 = vmatprep.subr.bf16.mxu1 %v824_v2  ;;  %v828_v5 = vld [vmem:[#allocation2 + $0x24] ss:$16 sps:$4 sm:$0xff]   ;;  %v830_v6 = vld [vmem:[#allocation2 + $0x2c] ss:$16 sps:$4 sm:$0xff]   ;;  %v832_v7 = vld [vmem:[#allocation2 + $0x20] ss:$16 sps:$4 sm:$0xff]  }
  0x29   :  { %266 = vmatpush1.bf16.msra.mxu0 %v826_v3  ;;  %307 = vmatpush1.bf16.msra.mxu1 %v827_v4  ;;  %v833_v8 = vld [vmem:[#allocation2 + $0x28] ss:$16 sps:$4 sm:$0xff]   ;;  %v834_v9 = vld [vmem:[#allocation2 + $0x44] ss:$16 sps:$4 sm:$0xff]   ;;  %v836_v10 = vld [vmem:[#allocation2 + $0x4c] ss:$16 sps:$4 sm:$0xff]   ;;  %v85_v3 = vlaneseq }
  0x2a   :  { %267 = vmatprep.subr.bf16.mxu0 %v828_v5  ;;  %308 = vmatprep.subr.bf16.mxu1 %v830_v6  ;;  %v838_v11 = vld [vmem:[#allocation2 + $0x40] ss:$16 sps:$4 sm:$0xff]   ;;  %v839_v12 = vld [vmem:[#allocation2 + $0x48] ss:$16 sps:$4 sm:$0xff]   ;;  %v840_v13 = vld [vmem:[#allocation2 + $0x64] ss:$16 sps:$4 sm:$0xff]  }
  0x2b   :  { %v842_v14 = vld [vmem:[#allocation2 + $0x6c] ss:$16 sps:$4 sm:$0xff]   ;;  %v844_v15 = vld [vmem:[#allocation2 + $0x60] ss:$16 sps:$4 sm:$0xff]   ;;  %v845_v16 = vld [vmem:[#allocation2 + $0x68] ss:$16 sps:$4 sm:$0xff]  }
  0x2c   :  { %v846_v17 = vld [vmem:[#allocation2 + $0x84] ss:$16 sps:$4 sm:$0xff]   ;;  %v848_v18 = vld [vmem:[#allocation2 + $0x8c] ss:$16 sps:$4 sm:$0xff]   ;;  %v850_v19 = vld [vmem:[#allocation2 + $0x80] ss:$16 sps:$4 sm:$0xff]  }
  0x2d   :  { %268 = vmatpush1.bf16.msra.mxu0 %v832_v7  ;;  %309 = vmatpush1.bf16.msra.mxu1 %v833_v8  ;;  %v851_v20 = vld [vmem:[#allocation2 + $0x88] ss:$16 sps:$4 sm:$0xff]   ;;  %v852_v21 = vld [vmem:[#allocation2 + $0xa4] ss:$16 sps:$4 sm:$0xff]   ;;  %v854_v22 = vld [vmem:[#allocation2 + $0xac] ss:$16 sps:$4 sm:$0xff]  }
  0x2e   :  { %269 = vmatprep.subr.bf16.mxu0 %v834_v9  ;;  %310 = vmatprep.subr.bf16.mxu1 %v836_v10  ;;  %v856_v23 = vld [vmem:[#allocation2 + $0xa0] ss:$16 sps:$4 sm:$0xff]   ;;  %v857_v24 = vld [vmem:[#allocation2 + $0xa8] ss:$16 sps:$4 sm:$0xff]   ;;  %v858_v25 = vld [vmem:[#allocation2 + $0xc4] ss:$16 sps:$4 sm:$0xff]  }
  0x2f   :  { %v860_v26 = vld [vmem:[#allocation2 + $0xcc] ss:$16 sps:$4 sm:$0xff]   ;;  %v862_v27 = vld [vmem:[#allocation2 + $0xc0] ss:$16 sps:$4 sm:$0xff]   ;;  %v863_v28 = vld [vmem:[#allocation2 + $0xc8] ss:$16 sps:$4 sm:$0xff]  }
  0x30   :  { %v864_v29 = vld [vmem:[#allocation2 + $0xe4] ss:$16 sps:$4 sm:$0xff]   ;;  %v866_v30 = vld [vmem:[#allocation2 + $0xec] ss:$16 sps:$4 sm:$0xff]   ;;  %v868_v31 = vld [vmem:[#allocation2 + $0xe0] ss:$16 sps:$4 sm:$0xff]  }
  0x31   :  { %270 = vmatpush1.bf16.msra.mxu0 %v838_v11  ;;  %311 = vmatpush1.bf16.msra.mxu1 %v839_v12  ;;  %v869_v32 = vld [vmem:[#allocation2 + $0xe8] ss:$16 sps:$4 sm:$0xff]   ;;  %v1014_v33 = vld [vmem:[%s1028_s0] sm:$0xf]  ;;  %v878_v43 = vld [vmem:[#allocation4 + $0x50] sm:$0xff]   ;;  %v86_v4 = vshrl.u32 %v85_v3, 7 }
  0x32   :  { %271 = vmatprep.subr.bf16.mxu0 %v840_v13  ;;  %312 = vmatprep.subr.bf16.mxu1 %v842_v14  ;;  %v870_v34 = vld [vmem:[#allocation4 + $0x40] sm:$0xff]   ;;  %v50_v37 = vpack.c.bf16 %v1014_v33, %v1014_v33  ;;  %v875_v40 = vld [vmem:[#allocation4 + $0xc8] sm:$0xff]   ;;  %v879_v44 = vld [vmem:[#allocation4 + $0xd0] sm:$0xff]  }
  0x33   :  { %v871_v35 = vld [vmem:[#allocation4 + $0xc0] sm:$0xff]   ;;  %v876_v41 = vld [vmem:[#allocation4 + $0x8] sm:$0xff]   ;;  %v880_v45 = vld [vmem:[#allocation4 + $0x10] sm:$0xff]   ;;  %v87_v5 = vsub.s32 0, %v86_v4  ;;  %v95_v6 = vsub.s32 2, %v86_v4  ;;  %v91_v8 = vsub.s32 1, %v86_v4 }
  0x34   :  { %v872_v36 = vld [vmem:[#allocation4] sm:$0xff]   ;;  %v877_v42 = vld [vmem:[#allocation4 + $0x88] sm:$0xff]   ;;  %v881_v46 = vld [vmem:[#allocation4 + $0x90] sm:$0xff]   ;;  %v99_v9 = vsub.s32 3, %v86_v4 }
  0x35   :  { %272 = vmatpush1.bf16.msra.mxu0 %v844_v15  ;;  %313 = vmatpush1.bf16.msra.mxu1 %v845_v16  ;;  %v873_v38 = vld [vmem:[#allocation4 + $0x80] sm:$0xff]   ;;  %v882_v47 = vld [vmem:[#allocation4 + $0x58] sm:$0xff]   ;;  %v890_v55 = vld [vmem:[#allocation4 + $0x68] sm:$0xff]  }
  0x36   :  { %273 = vmatprep.subr.bf16.mxu0 %v846_v17  ;;  %314 = vmatprep.subr.bf16.mxu1 %v848_v18  ;;  %v883_v48 = vld [vmem:[#allocation4 + $0xd8] sm:$0xff]   ;;  %v886_v51 = vld [vmem:[#allocation4 + $0x60] sm:$0xff]   ;;  %v891_v56 = vld [vmem:[#allocation4 + $0xe8] sm:$0xff]  }
  0x37   :  { %v884_v49 = vld [vmem:[#allocation4 + $0x18] sm:$0xff]   ;;  %v887_v52 = vld [vmem:[#allocation4 + $0xe0] sm:$0xff]   ;;  %v892_v57 = vld [vmem:[#allocation4 + $0x28] sm:$0xff]  }
  0x38   :  { %v885_v50 = vld [vmem:[#allocation4 + $0x98] sm:$0xff]   ;;  %v888_v53 = vld [vmem:[#allocation4 + $0x20] sm:$0xff]   ;;  %v893_v58 = vld [vmem:[#allocation4 + $0xa8] sm:$0xff]  }
  0x39   :  { %274 = vmatpush1.bf16.msra.mxu0 %v850_v19  ;;  %315 = vmatpush1.bf16.msra.mxu1 %v851_v20  ;;  %v889_v54 = vld [vmem:[#allocation4 + $0xa0] sm:$0xff]   ;;  %v894_v59 = vld [vmem:[#allocation4 + $0x70] sm:$0xff]   ;;  %v898_v63 = vld [vmem:[#allocation4 + $0x78] sm:$0xff]  }
  0x3a   :  { %275 = vmatprep.subr.bf16.mxu0 %v852_v21  ;;  %316 = vmatprep.subr.bf16.mxu1 %v854_v22  ;;  %v895_v60 = vld [vmem:[#allocation4 + $0xf0] sm:$0xff]   ;;  %v899_v0 = vld [vmem:[#allocation4 + $0xf8] sm:$0xff]   ;;  %v83_v7 = vld [vmem:[%s1030_s2] sm:$0xf] }
  0x3b   :  { %v896_v61 = vld [vmem:[#allocation4 + $0x30] sm:$0xff]   ;;  %v900_v1 = vld [vmem:[#allocation4 + $0x38] sm:$0xff]   ;;  %v88_v10 = vrot.slane %v83_v7, %v87_v5  ;;  %v96_v11 = vrot.slane %v83_v7, %v95_v6  ;;  %v92_v12 = vrot.slane %v83_v7, %v91_v8  ;;  %v100_v13 = vrot.slane %v83_v7, %v99_v9 }
  0x3c   :  { %v897_v62 = vld [vmem:[#allocation4 + $0xb0] sm:$0xff]   ;;  %v901_v2 = vld [vmem:[#allocation4 + $0xb8] sm:$0xff]  }
  0x3d   :  { %276 = vmatpush1.bf16.msra.mxu0 %v856_v23  ;;  %317 = vmatpush1.bf16.msra.mxu1 %v857_v24 }
  0x3e   :  { %277 = vmatprep.subr.bf16.mxu0 %v858_v25  ;;  %318 = vmatprep.subr.bf16.mxu1 %v860_v26 }
  0x41   :  { %278 = vmatpush1.bf16.msra.mxu0 %v862_v27  ;;  %319 = vmatpush1.bf16.msra.mxu1 %v863_v28 }
  0x42   :  { %279 = vmatprep.subr.bf16.mxu0 %v864_v29  ;;  %320 = vmatprep.subr.bf16.mxu1 %v866_v30 }
  0x45   :  { %280 = vmatpush1.bf16.msra.mxu0 %v868_v31  ;;  %321 = vmatpush1.bf16.msra.mxu1 %v869_v32 }
  0x46   :  { %771 = vmatprep.subr.bf16.mxu0 %v870_v34  ;;  %793 = vmatprep.subr.bf16.mxu1 %v871_v35 }
  0x48   :  { %298 = vmatmul.mubr.bf16.vlgmr.msra.gmra.mrb[0].mxu0 %v50_v37  ;;  %339 = vmatmul.mubr.bf16.vlgmr.msra.gmra.mrb[0].mxu1 %v50_v37  ;;  %v738_v37 = vld [vmem:[%s1032_s4] ss:$0 sm:$0xff] }
  0x49   :  { %772 = vmatpush3.bf16.msra.mxu0 %v872_v36  ;;  %794 = vmatpush3.bf16.msra.mxu1 %v873_v38 }
  0x4a   :  { %773 = vmatprep.subr.bf16.mxu0 %v874_v39  ;;  %795 = vmatprep.subr.bf16.mxu1 %v875_v40 }
  0x4d   :  { %774 = vmatpush3.bf16.msra.mxu0 %v876_v41  ;;  %796 = vmatpush3.bf16.msra.mxu1 %v877_v42 }
  0x4e   :  { %775 = vmatprep.subr.bf16.mxu0 %v878_v43  ;;  %797 = vmatprep.subr.bf16.mxu1 %v879_v44 }
  0x51   :  { %776 = vmatpush3.bf16.msra.mxu0 %v880_v45  ;;  %798 = vmatpush3.bf16.msra.mxu1 %v881_v46 }
  0x52   :  { %777 = vmatprep.subr.bf16.mxu0 %v882_v47  ;;  %799 = vmatprep.subr.bf16.mxu1 %v883_v48 }
  0x55   :  { %778 = vmatpush3.bf16.msra.mxu0 %v884_v49  ;;  %800 = vmatpush3.bf16.msra.mxu1 %v885_v50 }
  0x56   :  { %779 = vmatprep.subr.bf16.mxu0 %v886_v51  ;;  %801 = vmatprep.subr.bf16.mxu1 %v887_v52 }
  0x59   :  { %780 = vmatpush3.bf16.msra.mxu0 %v888_v53  ;;  %802 = vmatpush3.bf16.msra.mxu1 %v889_v54 }
  0x5a   :  { %781 = vmatprep.subr.bf16.mxu0 %v890_v55  ;;  %803 = vmatprep.subr.bf16.mxu1 %v891_v56 }
  0x5d   :  { %782 = vmatpush3.bf16.msra.mxu0 %v892_v57  ;;  %804 = vmatpush3.bf16.msra.mxu1 %v893_v58 }
  0x5e   :  { %783 = vmatprep.subr.bf16.mxu0 %v894_v59  ;;  %805 = vmatprep.subr.bf16.mxu1 %v895_v60 }
  0x61   :  { %784 = vmatpush3.bf16.msra.mxu0 %v896_v61  ;;  %806 = vmatpush3.bf16.msra.mxu1 %v897_v62 }
  0x62   :  { %785 = vmatprep.subr.bf16.mxu0 %v898_v63  ;;  %807 = vmatprep.subr.bf16.mxu1 %v899_v0 }
  0x65   :  { %786 = vmatpush3.bf16.msra.mxu0 %v900_v1  ;;  %808 = vmatpush3.bf16.msra.mxu1 %v901_v2 }
 0x11b   :  { %v299_v14 = vpop.f32.mrb[0].mxu0  ;;  %v340_v15 = vpop.f32.mrb[0].mxu1 }
 0x11c   :  { %v300_v16 = vadd.f32 %v299_v14, %v88_v10  ;;  %v341_v17 = vadd.f32 %v340_v15, %v96_v11  ;;  %v301_v18 = vpop.f32.mrb[1].mxu0  ;;  %v342_v19 = vpop.f32.mrb[1].mxu1 }
 0x11d   :  { %v302_v20 = vadd.f32 %v301_v18, %v92_v12  ;;  %v343_v21 = vadd.f32 %v342_v19, %v100_v13  ;;  %v303_v22 = vpop.f32.mrb[2].mxu0  ;;  %v344_v23 = vpop.f32.mrb[2].mxu1 }
 0x11e   :  { %v347_v24 = vmax.f32 %v300_v16, 0.0  ;;  %v349_v25 = vmax.f32 %v341_v17, 0.0  ;;  %v304_v26 = vpop.f32.mrb[3].mxu0  ;;  %v345_v27 = vpop.f32.mrb[3].mxu1 }
 0x11f   :  { %v348_v28 = vmax.f32 %v302_v20, 0.0  ;;  %v350_v29 = vmax.f32 %v343_v21, 0.0 }
 0x120   :  { %v353_v30 = vpack.c.bf16 %v349_v25, %v349_v25  ;;  %v351_v34 = vpack.c.bf16 %v347_v24, %v347_v24 }
 0x121   :  { %v352_v31 = vpack.c.bf16 %v348_v28, %v348_v28  ;;  %v354_v32 = vpack.c.bf16 %v350_v29, %v350_v29 }
 0x123   :  { %650 = vmatprep.mubr.bf16.mxu0 %v352_v31  ;;  %690 = vmatprep.mubr.bf16.mxu1 %v354_v32 }
 0x124   :  { %651 = vmatmul.mubr.bf16.vlgmr.msra.gmra.mrb[4].mxu0 %v351_v34  ;;  %691 = vmatmul.mubr.bf16.vlgmr.msra.gmra.mrb[4].mxu1 %v353_v30 }
 0x1f7   :  { %v787_v35 = vpop.f32.mrb[4].mxu0  ;;  %v809_v36 = vpop.f32.mrb[4].mxu1 }
 0x1f8   :  { %v788_v38 = vpop.f32.mrb[5].mxu0  ;;  %v810_v39 = vpop.f32.mrb[5].mxu1 }
 0x1f9   :  { %v789_v40 = vadd.f32 %v788_v38, %v787_v35  ;;  %v811_v41 = vadd.f32 %v810_v39, %v809_v36  ;;  %v790_v42 = vpop.f32.mrb[6].mxu0  ;;  %v812_v43 = vpop.f32.mrb[6].mxu1 }
 0x1fa   :  { %v791_v44 = vpop.f32.mrb[7].mxu0  ;;  %v813_v45 = vpop.f32.mrb[7].mxu1 }
 0x1fb   :  { %v653_v46 = vadd.f32 %v789_v40, %v738_v37 }
 0x1fd   :  { %v693_v47 = vadd.f32 %v811_v41, %v653_v46 }
 0x1ff   :  { %v698_v48 = vadd.f32 %v693_v47, %v1014_v33 }
 0x201   :  { %699 = vst [vmem:[%s1033_s5] sm:$0xf] %v698_v48 }
 0x202   :  { %704 = vsyncpa [#allocation3], 1 }
 0x203   :  { %705 = vsyncpa [#allocation5], 1 }

</bundles_post_ra>
